<compile_context>
chip_gen: v7x
topology: tpu7x:2x2x1
jax: 0.10.0
libtpu: 0.0.40
codegen_flags: <defaults>
</compile_context>

<pallas_src>
import functools

import numpy as np
import jax
import jax.numpy as jnp
from jax.experimental import pallas as pl
from jax.experimental.pallas import tpu as pltpu

_QUERY_UNIT = 32        # sublane tile unit (covers int8 (32,128) and f32 (8,128) tiling)
_TQ_MAX = 256           # max query-tile rows
_LANE = 128             # point-axis padding / lane-fold unit
_COORD_PAD = 8          # xyz padded to 8 columns -> aligned MXU contraction dim
_COORD_LIMIT = 1e15     # |coords| above this could overflow the f32 distance math
_PAD_COORD = 1e17       # exact-path pad coordinate: far away, no f32 overflow
_PAD_DIST = 1e34        # MXU-path pad "distance": > any real threshold, < f32 max


def _round_up(x, m):
    return ((x + m - 1) // m) * m


def _ceil_div(a, b):
    return -(-a // b)


def _next_pow2(x):
    x = max(int(x), 1)
    return 1 << (x - 1).bit_length()


def _bucket_tiles(n):
    """Round a tile count up to the next value in {1,2,3,4,6,8,12,16,24,...}.

    Bounds padding waste at 50% while keeping the number of distinct compiled
    shapes logarithmic in the problem size.
    """
    n = max(int(n), 1)
    if n <= 4:
        return n
    k = 4
    while True:
        if n <= k:
            return k
        if n <= (k * 3) // 2:
            return (k * 3) // 2
        k *= 2


def _pick_point_tile(pair_bytes):
    """Per-generation point-tile cap and scoped-VMEM limit.

    pair_bytes = HBM bytes written per (query, point) pair.
    """
    try:
        vmem = int(pltpu.get_tpu_info().vmem_capacity_bytes)
    except Exception:
        vmem = 64 * 1024 * 1024  # conservative (v7x-sized) fallback
    if vmem >= 100 * 1024 * 1024:
        # v5e / v6e: 128 MiB physical VMEM -> big resident output blocks.
        return (16384 if pair_bytes >= 2 else 32768), 100 * 1024 * 1024
    # v7x (64 MiB physical) or unknown: ~48 MiB scoped (physical minus headroom).
    limit = min(48 * 1024 * 1024, max(vmem - 16 * 1024 * 1024, vmem // 2))
    return (8192 if pair_bytes >= 2 else 16384), limit


def _frs_kernel(thresh_ref, q_ref, pt_ref, *refs, metric, ignore_query_point,
                want_dist, want_mask, mxu):
    """One (query tile) x (point tile) grid step.

    thresh_ref : SMEM (1, 1) f32   radius threshold (squared radius for L2)
    q_ref      : VMEM (TQ, 8)      queries; MXU path: [x, y, z, |q|^2, 1, 0,0,0]
    pt_ref     : VMEM (8, TN)      points;  MXU path: [-2x,-2y,-2z, 1, |p|^2, 0,0,0]^T
                                   exact path: raw transposed xyz (pad cols far away)
    refs       : ([dist_ref] if want_dist) + ([mask_ref] if want_mask)
                 + [cnt_ref (TQ,1) i32] + [acc_ref (TQ,128) i32 scratch]
    """
    acc_ref = refs[-1]
    outs = list(refs[:-1])
    dist_ref = outs.pop(0) if want_dist else None
    mask_ref = outs.pop(0) if want_mask else None
    cnt_ref = outs[0]

    j = pl.program_id(1)

    @pl.when(j == 0)
    def _init():
        acc_ref[...] = jnp.zeros_like(acc_ref)

    thresh = thresh_ref[0, 0]
    q = q_ref[...]          # (TQ, 8)
    p = pt_ref[...]         # (8, TN)

    if mxu:
        # Augmented dot: q_aug . p_aug = ||q||^2 + ||p||^2 - 2 q.p = ||q - p||^2.
        # f32 operands take Mosaic's exact multi-pass f32 matmul; bf16 operands
        # (opt-in, see mxu_precision) take a single MXU pass.
        d = jnp.dot(q, p, preferred_element_type=jnp.float32)          # (TQ, TN)
    else:
        # Exact VALU path: needed for L1 / Linf and for exact zeros with
        # ignore_query_point.
        dx = q[:, 0:1] - p[0:1, :]
        dy = q[:, 1:2] - p[1:2, :]
        dz = q[:, 2:3] - p[2:3, :]
        if metric == "L2":
            d = dx * dx + dy * dy + dz * dz
        elif metric == "L1":
            d = jnp.abs(dx) + jnp.abs(dy) + jnp.abs(dz)
        else:  # "Linf"
            d = jnp.maximum(jnp.maximum(jnp.abs(dx), jnp.abs(dy)), jnp.abs(dz))

    # Radius decision on the raw value: thresh >= 0, so this is identical to
    # deciding on max(d, 0) and saves one VALU op/element on the mask path.
    m = d <= thresh
    if ignore_query_point:
        m = jnp.logical_and(m, d > 0.0)

    if want_dist:
        d_store = jnp.maximum(d, 0.0) if mxu else d     # clamp only what is stored
        dist_ref[...] = d_store.astype(dist_ref.dtype)
    if want_mask:
        mask_ref[...] = m.astype(jnp.int8)

    # Neighbor-count accumulation: fold the TN lanes down to a lane-wise
    # (TQ, 128) partial-sum scratch with lane-aligned slice adds; the cross-lane
    # XLU reduce and the (TQ, 1) store happen once, on the last point tile.
    tn = m.shape[1]
    folded = m[:, 0:_LANE].astype(jnp.int32)
    for k in range(1, tn // _LANE):
        folded = folded + m[:, k * _LANE:(k + 1) * _LANE].astype(jnp.int32)
    acc_ref[...] += folded

    @pl.when(j == pl.num_programs(1) - 1)
    def _finalize():
        cnt_ref[...] = jnp.sum(acc_ref[...], axis=1, keepdims=True)


@functools.lru_cache(maxsize=None)
def _build_frs_call(M_pad, N_pad, TQ, TN, metric, ignore_query_point,
                    want_dist, dist_dtype_name, want_mask, mxu, vmem_limit):
    dist_dtype = jnp.float32 if dist_dtype_name == "float32" else jnp.bfloat16

    kernel = functools.partial(
        _frs_kernel, metric=metric, ignore_query_point=ignore_query_point,
        want_dist=want_dist, want_mask=want_mask, mxu=mxu)

    out_shape = []
    out_specs = []
    if want_dist:
        out_shape.append(jax.ShapeDtypeStruct((M_pad, N_pad), dist_dtype))
        out_specs.append(pl.BlockSpec((TQ, TN), lambda i, j: (i, j)))
    if want_mask:
        out_shape.append(jax.ShapeDtypeStruct((M_pad, N_pad), jnp.int8))
        out_specs.append(pl.BlockSpec((TQ, TN), lambda i, j: (i, j)))
    out_shape.append(jax.ShapeDtypeStruct((M_pad, 1), jnp.int32))
    out_specs.append(pl.BlockSpec((TQ, 1), lambda i, j: (i, 0)))

    return pl.pallas_call(
        kernel,
        out_shape=tuple(out_shape),
        grid=(M_pad // TQ, N_pad // TN),
        in_specs=[
            pl.BlockSpec(memory_space=pltpu.MemorySpace.SMEM),       # thresh (1,1)
            pl.BlockSpec((TQ, _COORD_PAD), lambda i, j: (i, 0)),     # query tile
            pl.BlockSpec((_COORD_PAD, TN), lambda i, j: (0, j)),     # point tile
        ],
        out_specs=tuple(out_specs),
        scratch_shapes=[pltpu.VMEM((TQ, _LANE), jnp.int32)],         # count partials
        compiler_params=pltpu.CompilerParams(
            dimension_semantics=("parallel", "arbitrary"),
            vmem_limit_bytes=vmem_limit),
    )


def _run_pairwise(points, queries, radius, metric, ignore_query_point,
                  want_dist, dist_dtype_name, want_mask, mxu_precision):
    points = jnp.asarray(points, jnp.float32)
    queries = jnp.asarray(queries, jnp.float32)
    if points.ndim != 2 or points.shape[1] != 3 or queries.ndim != 2 or queries.shape[1] != 3:
        raise ValueError("points and queries must have shapes (N, 3) and (M, 3)")
    N = int(points.shape[0])
    M = int(queries.shape[0])

    r = float(radius)
    if not (0.0 <= r < _COORD_LIMIT):
        raise ValueError(f"radius must be in [0, {_COORD_LIMIT:g})")
    if M > 0 and N > 0:
        max_abs = float(jnp.maximum(jnp.max(jnp.abs(points)), jnp.max(jnp.abs(queries))))
        if not (np.isfinite(max_abs) and max_abs < _COORD_LIMIT):
            raise ValueError(
                f"FixedRadiusSearch: coordinate magnitudes must be finite and < "
                f"{_COORD_LIMIT:g} (got max |coord| = {max_abs:g}); larger values can "
                f"overflow the f32 distance computation / padded-point encoding.")

    thresh = r * r if metric == "L2" else r
    mxu = (metric == "L2") and (not ignore_query_point)

    pair_bytes = (4 if dist_dtype_name == "float32" else 2) if want_dist else 0
    pair_bytes += 1 if want_mask else 0
    tn_cap, vmem_limit = _pick_point_tile(pair_bytes)

    # ---- bucketed padding: only padded sizes (not radius) enter the compile key ----
    if M <= _TQ_MAX:
        TQ = _next_pow2(_round_up(max(M, 1), _QUERY_UNIT))
        M_pad = TQ
    else:
        TQ = _TQ_MAX
        M_pad = TQ * _bucket_tiles(_ceil_div(M, TQ))

    if N <= tn_cap:
        TN = _next_pow2(_round_up(max(N, 1), _LANE))
        N_pad = TN
    else:
        TN = tn_cap
        N_pad = TN * _bucket_tiles(_ceil_div(N, TN))

    # ---- operand construction (O(M+N) wrapper work) ----
    q_pad = jnp.zeros((M_pad, _COORD_PAD), jnp.float32)
    p_pad = jnp.zeros((_COORD_PAD, N_pad), jnp.float32)
    if mxu:
        # q_aug = [x, y, z, ||q||^2, 1, 0, 0, 0]
        # p_aug = [-2x, -2y, -2z, 1, ||p||^2, 0, 0, 0]       (as columns)
        # so that q_aug . p_aug = ||q||^2 + ||p||^2 - 2 q.p = ||q - p||^2.
        q_pad = q_pad.at[:M, :3].set(queries)
        q_pad = q_pad.at[:M, 3].set(jnp.sum(queries * queries, axis=1))
        q_pad = q_pad.at[:M, 4].set(1.0)
        p_pad = p_pad.at[3, :].set(1.0)
        p_pad = p_pad.at[4, :].set(_PAD_DIST)               # pad columns -> huge distance
        p_pad = p_pad.at[:3, :N].set(-2.0 * points.T)
        p_pad = p_pad.at[4, :N].set(jnp.sum(points * points, axis=1))
        if mxu_precision == "bfloat16":
            # Single MXU pass (v5e speed path); ~1e-2 relative distance error.
            q_pad = q_pad.astype(jnp.bfloat16)
            p_pad = p_pad.astype(jnp.bfloat16)
    else:
        q_pad = q_pad.at[:M, :3].set(queries)
        p_pad = p_pad.at[:3, :].set(_PAD_COORD)             # pad columns far away
        p_pad = p_pad.at[:3, :N].set(points.T)

    thresh_arr = jnp.full((1, 1), thresh, jnp.float32)

    call = _build_frs_call(M_pad, N_pad, TQ, TN, metric, ignore_query_point,
                           want_dist, dist_dtype_name, want_mask, mxu, vmem_limit)
    outs = call(thresh_arr, q_pad, p_pad)

    idx = 0
    dist = mask = None
    if want_dist:
        dist = outs[idx]
        idx += 1
    if want_mask:
        mask = outs[idx]
        idx += 1
    cnt = outs[idx]
    return dist, mask, cnt, thresh


class FixedRadiusSearch:
    """JAX/Pallas port of open3d.ml.torch.layers.FixedRadiusSearch (forward only).

    The spatial hash table of the original op is only an acceleration structure;
    here the radius test is done densely on-TPU, which yields identical compact
    results (query-major, ascending point index). Variable-length compaction is
    done on the host because the output shapes are data dependent. Returned
    arrays are numpy: neighbors_index (index_dtype), neighbors_row_splits
    (int64, like torch.LongTensor), neighbors_distance (float32; squared for L2).

    Extra (opt-in) knobs:
      distance_dtype: "float32" (default) or "bfloat16". bfloat16 writes bf16
        distances plus an exact int8 mask (25% less HBM write traffic on the
        write-bound distance variant); returned distances are then bf16-accurate.
      mxu_precision: "float32" (default, Mosaic exact multi-pass f32 matmul) or
        "bfloat16" (single MXU pass; faster on v5e; ~1e-2 relative distance error
        near the radius boundary).
    """

    def __init__(self, metric="L2", ignore_query_point=False,
                 return_distances=False, max_hash_table_size=32 * 2 ** 20,
                 index_dtype=jnp.int32, distance_dtype="float32",
                 mxu_precision="float32", **kwargs):
        assert metric in ("L1", "L2", "Linf")
        self.metric = metric
        self.ignore_query_point = bool(ignore_query_point)
        self.return_distances = bool(return_distances)
        self.max_hash_table_size = max_hash_table_size  # unused: dense radius test
        self.index_dtype = np.dtype(index_dtype)
        assert self.index_dtype in (np.dtype(np.int32), np.dtype(np.int64))
        assert distance_dtype in ("float32", "bfloat16")
        self.distance_dtype = distance_dtype
        assert mxu_precision in ("float32", "bfloat16")
        self.mxu_precision = mxu_precision

    def __call__(self, points, queries, radius, points_row_splits=None,
                 queries_row_splits=None, hash_table_size_factor=1 / 64,
                 hash_table=None):
        # TODO(synk): batched row_splits (>1 batch item) and precomputed hash
        # tables are not supported; single point-cloud semantics only.
        for rs in (points_row_splits, queries_row_splits):
            if rs is not None and np.asarray(rs).reshape(-1).shape[0] > 2:
                raise NotImplementedError("batched row_splits are not supported")

        M = int(queries.shape[0])
        N = int(points.shape[0])

        want_dist = self.return_distances
        want_mask = (not self.return_distances) or (self.distance_dtype == "bfloat16")

        dist, mask, cnt, thresh = _run_pairwise(
            points, queries, radius, self.metric, self.ignore_query_point,
            want_dist, self.distance_dtype, want_mask, self.mxu_precision)

        # ---- host-side compaction (output shapes are data dependent) ----
        cnt_np = np.asarray(cnt)[:M, 0].astype(np.int64)
        row_splits = np.zeros((M + 1,), np.int64)
        row_splits[1:] = np.cumsum(cnt_np)

        if mask is not None:
            mask_np = np.asarray(mask)[:M, :N] != 0
        else:
            # f32 distances are authoritative: recompute the in-kernel decision
            # bit-identically from the stored (clamped) values.
            d_np = np.asarray(dist)[:M, :N]
            mask_np = d_np <= np.float32(thresh)
            if self.ignore_query_point:
                mask_np &= d_np > np.float32(0.0)

        qidx, pidx = np.nonzero(mask_np)  # row-major: query-major, ascending point idx
        neighbors_index = pidx.astype(self.index_dtype)
        assert int(row_splits[-1]) == int(neighbors_index.shape[0]), \
            "internal error: kernel counts and mask disagree"

        if self.return_distances:
            d_np = np.asarray(dist)[:M, :N]
            neighbors_distance = d_np[qidx, pidx].astype(np.float32)
        else:
            neighbors_distance = np.zeros((0,), np.float32)
        return neighbors_index, row_splits, neighbors_distance


if __name__ == "__main__":
    key = jax.random.PRNGKey(0)
    k1, k2 = jax.random.split(key)
    points = jax.random.normal(k1, (20, 3), dtype=jnp.float32)
    queries = jax.random.normal(k2, (10, 3), dtype=jnp.float32)
    radius = 0.8

    P = np.asarray(points, np.float32)
    Q = np.asarray(queries, np.float32)
    diff = Q[:, None, :] - P[None, :, :]

    # L2 reference (squared distances, like Open3D).
    d2_ref = (diff ** 2).sum(-1)
    m_ref = d2_ref <= np.float32(radius * radius)
    rs_ref = np.concatenate([[0], np.cumsum(m_ref.sum(1))]).astype(np.int64)
    idx_ref = np.nonzero(m_ref)[1].astype(np.int32)
    dist_ref = d2_ref[m_ref].astype(np.float32)

    # 1) distances requested (f32 output, augmented-MXU L2 path).
    nsearch = FixedRadiusSearch(return_distances=True)
    nbr_idx, row_splits, nbr_dist = nsearch(points, queries, radius)
    jax.block_until_ready((nbr_idx, row_splits, nbr_dist))
    assert np.array_equal(np.asarray(row_splits), rs_ref), "row_splits mismatch"
    assert np.array_equal(np.asarray(nbr_idx), idx_ref), "neighbors_index mismatch"
    assert np.allclose(np.asarray(nbr_dist), dist_ref, atol=5e-5, rtol=1e-4), "distance mismatch"

    # 2) no distances (int8 mask output only).
    nsearch2 = FixedRadiusSearch(return_distances=False)
    nbr_idx2, row_splits2, nbr_dist2 = nsearch2(points, queries, radius)
    jax.block_until_ready((nbr_idx2, row_splits2, nbr_dist2))
    assert np.array_equal(np.asarray(row_splits2), rs_ref), "row_splits mismatch (mask)"
    assert np.array_equal(np.asarray(nbr_idx2), idx_ref), "neighbors_index mismatch (mask)"
    assert nbr_dist2.shape[0] == 0

    # 3) ignore_query_point with queries == points (exact VALU path).
    nsearch3 = FixedRadiusSearch(ignore_query_point=True)
    nbr_idx3, row_splits3, _ = nsearch3(points, points, radius)
    jax.block_until_ready((nbr_idx3, row_splits3))
    d_pp = ((P[:, None, :] - P[None, :, :]) ** 2).sum(-1)
    m_pp = (d_pp <= np.float32(radius * radius)) & (d_pp > 0)
    rs_pp = np.concatenate([[0], np.cumsum(m_pp.sum(1))]).astype(np.int64)
    idx_pp = np.nonzero(m_pp)[1].astype(np.int32)
    assert np.array_equal(np.asarray(row_splits3), rs_pp), "row_splits mismatch (ignore)"
    assert np.array_equal(np.asarray(nbr_idx3), idx_pp), "neighbors_index mismatch (ignore)"

    # 4) reduced-write mode: bf16 distances + exact int8 mask (opt-in).
    nsearch4 = FixedRadiusSearch(return_distances=True, distance_dtype="bfloat16")
    nbr_idx4, row_splits4, nbr_dist4 = nsearch4(points, queries, radius)
    jax.block_until_ready((nbr_idx4, row_splits4, nbr_dist4))
    assert np.array_equal(np.asarray(row_splits4), rs_ref), "row_splits mismatch (bf16)"
    assert np.array_equal(np.asarray(nbr_idx4), idx_ref), "neighbors_index mismatch (bf16)"
    assert np.allclose(np.asarray(nbr_dist4), dist_ref, rtol=2e-2, atol=1e-2), "bf16 distance mismatch"

    # 5) L1 metric (exact VALU path).
    d1_ref = np.abs(diff).sum(-1)
    m1_ref = d1_ref <= np.float32(radius)
    rs1_ref = np.concatenate([[0], np.cumsum(m1_ref.sum(1))]).astype(np.int64)
    idx1_ref = np.nonzero(m1_ref)[1].astype(np.int32)
    nsearch5 = FixedRadiusSearch(metric="L1", return_distances=True)
    nbr_idx5, row_splits5, nbr_dist5 = nsearch5(points, queries, radius)
    jax.block_until_ready((nbr_idx5, row_splits5, nbr_dist5))
    assert np.array_equal(np.asarray(row_splits5), rs1_ref), "row_splits mismatch (L1)"
    assert np.array_equal(np.asarray(nbr_idx5), idx1_ref), "neighbors_index mismatch (L1)"
    assert np.allclose(np.asarray(nbr_dist5), d1_ref[m1_ref].astype(np.float32), atol=1e-5)

    # 6) bf16 MXU operands (v5e fast path): smoke / internal-consistency test only,
    #    since borderline pairs may legitimately differ from the exact reference.
    nsearch6 = FixedRadiusSearch(return_distances=True, mxu_precision="bfloat16")
    nbr_idx6, row_splits6, nbr_dist6 = nsearch6(points, queries, radius)
    jax.block_until_ready((nbr_idx6, row_splits6, nbr_dist6))
    assert int(row_splits6[-1]) == nbr_idx6.shape[0]
    assert np.all(np.diff(row_splits6) >= 0)
    assert np.all(nbr_dist6 <= np.float32(radius * radius) + 1e-6)

    print("KERNEL_OK")
</pallas_src>

<mosaic_0001>
module attributes {stable_mosaic.version = 11 : i64} {
  func.func @_frs_kernel(%arg0: i32, %arg1: i32, %arg2: memref<1x1xf32, #tpu.memory_space<smem>>, %arg3: memref<32x8xf32, #tpu.memory_space<vmem>>, %arg4: memref<8x128xf32, #tpu.memory_space<vmem>>, %arg5: memref<32x128xf32, #tpu.memory_space<vmem>>, %arg6: memref<32x1xi32, #tpu.memory_space<vmem>>, %arg7: memref<32x128xi32, #tpu.memory_space<vmem>>) attributes {dimension_semantics = [#tpu.dimension_semantics<parallel>, #tpu.dimension_semantics<arbitrary>], iteration_bounds = array<i64: 1, 1>, scalar_prefetch = 0 : i64, scratch_operands = 1 : i64, tpu.core_type = #tpu.core_type<tc>, window_params = [{transform_indices = @transform_0, window_bounds = array<i64: 1, 1>}, {transform_indices = @transform_1, window_bounds = array<i64: 32, 8>}, {transform_indices = @transform_2, window_bounds = array<i64: 8, 128>}, {transform_indices = @transform_3, window_bounds = array<i64: 32, 128>}, {transform_indices = @transform_4, window_bounds = array<i64: 32, 1>}]} {
    %c0_i32 = arith.constant 0 : i32
    %0 = arith.cmpi eq, %arg1, %c0_i32 : i32
    %1 = arith.extui %0 : i1 to i32
    %c0_i32_0 = arith.constant 0 : i32
    %2 = arith.cmpi ne, %1, %c0_i32_0 : i32
    scf.if %2 {
      %c0_i32_15 = arith.constant 0 : i32
      %19 = vector.broadcast %c0_i32_15 : i32 to vector<32x128xi32>
      %c0_16 = arith.constant 0 : index
      %c0_17 = arith.constant 0 : index
      %20 = vector.load %arg7[%c0_16, %c0_17] : memref<32x128xi32, #tpu.memory_space<vmem>>, vector<32x128xi32>
      tpu.vector_store %arg7[%c0_16, %c0_17], %19 {strides = array<i32>} : memref<32x128xi32, #tpu.memory_space<vmem>>, vector<32x128xi32>,
    } else {
    }
    %c0 = arith.constant 0 : index
    %c0_1 = arith.constant 0 : index
    %3 = memref.load %arg2[%c0, %c0_1] : memref<1x1xf32, #tpu.memory_space<smem>>
    %c0_2 = arith.constant 0 : index
    %c0_3 = arith.constant 0 : index
    %4 = vector.load %arg3[%c0_2, %c0_3] : memref<32x8xf32, #tpu.memory_space<vmem>>, vector<32x8xf32>
    %c0_4 = arith.constant 0 : index
    %c0_5 = arith.constant 0 : index
    %5 = vector.load %arg4[%c0_4, %c0_5] : memref<8x128xf32, #tpu.memory_space<vmem>>, vector<8x128xf32>
    %cst = arith.constant dense<0.000000e+00> : vector<32x128xf32>
    %6 = tpu.matmul %4, %5, %cst {dimension_numbers = #tpu.dot_dimension_numbers<[1], [0], [0], [1], [0, 0, 1, 1], [], []>} : vector<32x8xf32>, vector<8x128xf32>, vector<32x128xf32> -> vector<32x128xf32>
    %7 = vector.broadcast %3 : f32 to vector<32x128xf32>
    %8 = arith.cmpf ole, %6, %7 : vector<32x128xf32>
    %cst_6 = arith.constant 0.000000e+00 : f32
    %9 = vector.broadcast %cst_6 : f32 to vector<32x128xf32>
    %10 = arith.maximumf %6, %9 : vector<32x128xf32>
    %c0_7 = arith.constant 0 : index
    %c0_8 = arith.constant 0 : index
    %11 = vector.load %arg5[%c0_7, %c0_8] : memref<32x128xf32, #tpu.memory_space<vmem>>, vector<32x128xf32>
    tpu.vector_store %arg5[%c0_7, %c0_8], %10 {strides = array<i32>} : memref<32x128xf32, #tpu.memory_space<vmem>>, vector<32x128xf32>,
    %12 = arith.extui %8 : vector<32x128xi1> to vector<32x128xi32>
    %c0_9 = arith.constant 0 : index
    %c0_10 = arith.constant 0 : index
    %13 = vector.load %arg7[%c0_9, %c0_10] : memref<32x128xi32, #tpu.memory_space<vmem>>, vector<32x128xi32>
    %14 = arith.addi %13, %12 : vector<32x128xi32>
    %c0_11 = arith.constant 0 : index
    %c0_12 = arith.constant 0 : index
    %15 = vector.load %arg7[%c0_11, %c0_12] : memref<32x128xi32, #tpu.memory_space<vmem>>, vector<32x128xi32>
    tpu.vector_store %arg7[%c0_11, %c0_12], %14 {strides = array<i32>} : memref<32x128xi32, #tpu.memory_space<vmem>>, vector<32x128xi32>,
    %c0_i32_13 = arith.constant 0 : i32
    %16 = arith.cmpi eq, %arg1, %c0_i32_13 : i32
    %17 = arith.extui %16 : i1 to i32
    %c0_i32_14 = arith.constant 0 : i32
    %18 = arith.cmpi ne, %17, %c0_i32_14 : i32
    scf.if %18 {
      %c0_15 = arith.constant 0 : index
      %c0_16 = arith.constant 0 : index
      %19 = vector.load %arg7[%c0_15, %c0_16] : memref<32x128xi32, #tpu.memory_space<vmem>>, vector<32x128xi32>
      %cst_17 = arith.constant dense<0> : vector<32xi32>
      %20 = vector.multi_reduction <add>, %19, %cst_17 [1] : vector<32x128xi32> to vector<32xi32>
      %21 = vector.shape_cast %20 : vector<32xi32> to vector<32x1xi32>
      %c0_18 = arith.constant 0 : index
      %c0_19 = arith.constant 0 : index
      %22 = vector.load %arg6[%c0_18, %c0_19] : memref<32x1xi32, #tpu.memory_space<vmem>>, vector<32x1xi32>
      tpu.vector_store %arg6[%c0_18, %c0_19], %21 {strides = array<i32>} : memref<32x1xi32, #tpu.memory_space<vmem>>, vector<32x1xi32>,
    } else {
    }
    return
  }
  func.func @transform_0(%arg0: i32, %arg1: i32) -> (i32, i32) {
    %c0_i32 = arith.constant 0 : i32
    %c0_i32_0 = arith.constant 0 : i32
    %c0_i32_1 = arith.constant 0 : i32
    return %c0_i32, %c0_i32_0 : i32, i32
  }
  func.func @transform_1(%arg0: i32, %arg1: i32) -> (i32, i32) {
    %c0_i32 = arith.constant 0 : i32
    %c0_i32_0 = arith.constant 0 : i32
    return %arg0, %c0_i32 : i32, i32
  }
  func.func @transform_2(%arg0: i32, %arg1: i32) -> (i32, i32) {
    %c0_i32 = arith.constant 0 : i32
    %c0_i32_0 = arith.constant 0 : i32
    return %c0_i32, %arg1 : i32, i32
  }
  func.func @transform_3(%arg0: i32, %arg1: i32) -> (i32, i32) {
    %c0_i32 = arith.constant 0 : i32
    return %arg0, %arg1 : i32, i32
  }
  func.func @transform_4(%arg0: i32, %arg1: i32) -> (i32, i32) {
    %c0_i32 = arith.constant 0 : i32
    %c0_i32_0 = arith.constant 0 : i32
    return %arg0, %c0_i32 : i32, i32
  }
}

</mosaic_0001>

<bundles_post_ra>
// kernel: tpu_custom_call.1
= control target key start
LH: loop header
LB: loop body
LE: loop exit
PB: predicated region body
PF: predicated region fallthrough
CT: control target
= control target key end

     0   :  { %vm32_vm0 = vcmask 64512   ;;  %s361_s0 = inlined_call_operand.<no memory space> [shape: f32[1,1], index: 0, kind: input, shape index: {}]   ;;  %s362_s1 = inlined_call_operand.vmem [shape: f32[32,8], index: 1, kind: input, shape index: {}]   ;;  %s363_s2 = inlined_call_operand.vmem [shape: f32[8,128], index: 2, kind: input, shape index: {}]   ;;  %s364_s3 = inlined_call_operand.hbm [shape: f32[32,128], index: 3, kind: output, shape index: {0}]   ;;  %s365_s4 = inlined_call_operand.vmem [shape: s32[32,1], index: 4, kind: output, shape index: {1}]  }
   0x1   :  { %v31_v0 = vld [vmem:[%s363_s2] sm:$0xff]  ;;  %v29_v2 = vld [vmem:[%s362_s1 + $0x10] sm:$0xff]  ;;  %v28_v3 = vld [vmem:[%s362_s1 + $0x8] sm:$0xff] }
   0x2   :  { %v27_v1 = vld [vmem:[%s362_s1] sm:$0xff]  ;;  %248 = vmatprep.subr.mxu0 %v31_v0  ;;  %256 = vmatprep.subr.mxu1 %v31_v0  ;;  %v30_v4 = vld [vmem:[%s362_s1 + $0x18] sm:$0xff] }
   0x3   :  { %11 = vsyncpa [#allocation5], 0  ;;  %249 = vmatpush3.msra.mxu0 %v31_v0  ;;  %257 = vmatpush3.msra.mxu1 %v31_v0  ;;  %v130_v5 = vstv %s361_s0  ;;  %v286_v14 = vmov 0   ;;  %s287_s0 = smov [#allocation4]  }
   0x4   :  { %250 = vmatprep.mubr.msk.f32.mxu0 %vm32_vm0, %v27_v1  ;;  %253 = vmatprep.mubr.msk.f32.mxu1 %vm32_vm0, %v29_v2  ;;  %s224_s1 = sshll.u32 %s287_s0, 4  ;;  %s225_s1 = int_to_ptr.vmem [resolvable:$true] %s224_s1 }
   0x5   :  { %251 = vmatmul.mubr.msk.f32.vlgmr.msra.gmra.mrb[0].mxu0 %vm32_vm0, %v28_v3  ;;  %254 = vmatmul.mubr.msk.f32.vlgmr.msra.gmra.mrb[0].mxu1 %vm32_vm0, %v30_v4  ;;  %s262_s26 = scalar_lea.vmem %s225_s1, 512  ;;  %p267_p1 = scmp.lt.s32.totalorder %s225_s1, %s225_s1 }
   0x6   :  { %p263_p0 = scmp.ne.s32.totalorder %s225_s1, %s262_s26  ;;  %p268_p2 = scmp.lt.s32.totalorder %s262_s26, %s262_s26 }
   0x8   :  { %p269_p3 = por %p268_p2, %p267_p1 }
   0xa   :  { %p270_p4 = pnand %p269_p3, %p263_p0 }
  0xd8   :  { %v252_v6 = vpop.f32.mrb[0].mxu0  ;;  %v255_v7 = vpop.f32.mrb[0].mxu1 }
  0xd9   :  { %vm132_vm1 = vcmp.le.f32.partialorder %v252_v6, %v130_v5  ;;  %v136_v8 = vmax.f32 %v252_v6, 0.0  ;;  %vm134_vm2 = vcmp.le.f32.partialorder %v255_v7, %v130_v5  ;;  %v138_v9 = vmax.f32 %v255_v7, 0.0  ;;  %v111_v10 = vpop.f32.mrb[1].mxu0  ;;  %v121_v11 = vpop.f32.mrb[1].mxu1 }
  0xda   :  { %vm131_vm3 = vcmp.le.f32.partialorder %v111_v10, %v130_v5  ;;  %v135_v12 = vmax.f32 %v111_v10, 0.0  ;;  %v137_v13 = vmax.f32 %v121_v11, 0.0  ;;  %v146_v16 = vsel %vm134_vm2, 1, %v286_v14 }
  0xdb   :  { %140 = vst [vmem:[#allocation4 + $0x8] sm:$0xff] %v136_v8  ;;  %142 = vst [vmem:[#allocation4 + $0x18] sm:$0xff] %v138_v9  ;;  %v143_v15 = vsel %vm131_vm3, 1, %v286_v14  ;;  %v144_v17 = vsel %vm132_vm1, 1, %v286_v14  ;;  %vm133_vm4 = vcmp.le.f32.partialorder %v121_v11, %v130_v5  ;;  %v203_v18 = vshrl.u32 %v146_v16, 16 }
  0xdc   :  { %139 = vst [vmem:[#allocation4] sm:$0xff] %v135_v12  ;;  %141 = vst [vmem:[#allocation4 + $0x10] sm:$0xff] %v137_v13  ;;  %v179_v19 = vshrl.u32 %v144_v17, 16  ;;  %v178_v22 = vand.u32 65535, %v144_v17  ;;  %v167_v23 = vshrl.u32 %v143_v15, 16  ;;  %v145_v24 = vsel %vm133_vm4, 1, %v286_v14 }
  0xdd   :  { %v205_v20 = vcvt.s32.f32 %v203_v18  ;;  %v191_v27 = vshrl.u32 %v145_v24, 16  ;;  %v166_v28 = vand.u32 65535, %v143_v15  ;;  %v202_v31 = vand.u32 65535, %v146_v16 }
  0xde   :  { %v181_v21 = vcvt.s32.f32 %v179_v19  ;;  %v180_v25 = vcvt.s32.f32 %v178_v22  ;;  %v169_v26 = vcvt.s32.f32 %v167_v23  ;;  %v190_v32 = vand.u32 65535, %v145_v24 }
  0xdf   :  { %208 = vadd.xlane.f32.xlu1 %v205_v20  ;;  %v193_v29 = vcvt.s32.f32 %v191_v27  ;;  %v168_v30 = vcvt.s32.f32 %v166_v28  ;;  %v204_v33 = vcvt.s32.f32 %v202_v31 }
  0xe0   :  { %184 = vadd.xlane.f32.xlu0 %v181_v21  ;;  %v192_v34 = vcvt.s32.f32 %v190_v32 }
  0xe3   :  { %182 = vadd.xlane.f32.xlu1 %v180_v25 }
  0xe4   :  { %172 = vadd.xlane.f32.xlu0 %v169_v26 }
  0xe7   :  { %196 = vadd.xlane.f32.xlu1 %v193_v29 }
  0xe8   :  { %170 = vadd.xlane.f32.xlu0 %v168_v30 }
  0xeb   :  { %206 = vadd.xlane.f32.xlu1 %v204_v33 }
  0xec   :  { %194 = vadd.xlane.f32.xlu0 %v192_v34 }
  0xed   :  { %273 = shalt.err (!%p270_p4)
}
  0xee   :  { %s274_s29 = scalar_lea.hbm %s364_s3, 512 }
  0xef   :  { %p275_p5 = scmp.ne.s32.totalorder %s364_s3, %s274_s29  ;;  %p278_p6 = scmp.lt.u32.totalorder %s274_s29, %s364_s3 }
  0xf1   :  { %p280_p7 = pnand %p278_p6, %p275_p5 }
  0xf3   :  { %283 = shalt.err (!%p280_p7)
}
  0xf4   :  { %s288_s8 = smov 128   ;;  %s289_s9 = smov 8   ;;  %vm214_vm5 = vcmask 7168  }
  0xf5   :  { %230 = dma.vmem_to_hbm [thread:$0]  %s225_s1, 512, %s364_s3, [#allocation5], %s288_s8, %s288_s8, %s289_s9  }
 0x16c   :  { %v209_v35 = vpop.xlane.xlu1 %208 }
 0x16d   :  { %v185_v36 = vpop.xlane.xlu0 %184  ;;  %v211_v46 = vcvt.f32.s32 %v209_v35 }
 0x16e   :  { %v187_v37 = vcvt.f32.s32 %v185_v36 }
 0x16f   :  { %v212_v53 = vshll.u32 %v211_v46, 16 }
 0x170   :  { %v183_v38 = vpop.xlane.xlu1 %182  ;;  %v188_v40 = vshll.u32 %v187_v37, 16 }
 0x171   :  { %v173_v39 = vpop.xlane.xlu0 %172  ;;  %v186_v41 = vcvt.f32.s32 %v183_v38 }
 0x172   :  { %v175_v42 = vcvt.f32.s32 %v173_v39 }
 0x173   :  { %v189_v43 = vadd.s32 %v188_v40, %v186_v41 }
 0x174   :  { %v197_v44 = vpop.xlane.xlu1 %196  ;;  %v176_v47 = vshll.u32 %v175_v42, 16 }
 0x175   :  { %v171_v45 = vpop.xlane.xlu0 %170  ;;  %216 = vst.msk [vmem:[%s365_s4 + $0x8] sm:$0xff] %vm214_vm5, %v189_v43  ;;  %v199_v48 = vcvt.f32.s32 %v197_v44 }
 0x176   :  { %v174_v49 = vcvt.f32.s32 %v171_v45 }
 0x177   :  { %v200_v54 = vshll.u32 %v199_v48, 16 }
 0x178   :  { %v177_v50 = vadd.s32 %v176_v47, %v174_v49  ;;  %v207_v51 = vpop.xlane.xlu1 %206 }
 0x179   :  { %v195_v52 = vpop.xlane.xlu0 %194  ;;  %v210_v55 = vcvt.f32.s32 %v207_v51 }
 0x17a   :  { %215 = vst.msk [vmem:[%s365_s4] sm:$0xff] %vm214_vm5, %v177_v50  ;;  %v198_v56 = vcvt.f32.s32 %v195_v52 }
 0x17b   :  { %v213_v57 = vadd.s32 %v212_v53, %v210_v55 }
 0x17c   :  { %v201_v58 = vadd.s32 %v200_v54, %v198_v56 }
 0x17d   :  { %218 = vst.msk [vmem:[%s365_s4 + $0x18] sm:$0xff] %vm214_vm5, %v213_v57 }
 0x17e   :  { %217 = vst.msk [vmem:[%s365_s4 + $0x10] sm:$0xff] %vm214_vm5, %v201_v58 }
 0x17f   :  { %284 = dma.done.wait [#allocation5], 512  }
 0x180   :  { %285 = vsyncadd [#allocation5], 4294966784 }
 0x181   :  { %238 = vsyncpa [#allocation5], 1 }

</bundles_post_ra>
